<compile_context>
chip_gen: v7x
topology: tpu7x:2x2x1
jax: 0.10.0
libtpu: 0.0.40
codegen_flags: <defaults>
</compile_context>

<pallas_src>
import functools

import jax
import jax.numpy as jnp
from jax.experimental import pallas as pl
from jax.experimental.pallas import tpu as pltpu

LANES = 128  # TPU vreg lane width.


def _round_up(n, m):
    return ((n + m - 1) // m) * m


def _num_tensorcores():
    """2 on v7x (two TensorCores per chip), else 1."""
    try:
        kind = jax.devices()[0].device_kind.lower()
    except Exception:
        return 1
    return 2 if ("v7" in kind or "7x" in kind) else 1


def _plan_batch_tiling(B, requested_tile_m=None):
    """Pick (tile_m, b_pad): large lane-multiple tiles, >=2 steps on v7x."""
    b128 = _round_up(max(B, 1), LANES)
    if requested_tile_m is not None:
        tm = max(LANES, _round_up(int(requested_tile_m), LANES))
    else:
        cap = 4096                       # big tiles amortize per-step overhead
        n_steps = -(-b128 // cap)
        if _num_tensorcores() >= 2 and b128 >= 2 * LANES:
            n_steps = max(n_steps, 2)    # let "parallel" use both v7x cores
        tm = min(b128, _round_up(-(-b128 // n_steps), LANES))
    b_pad = _round_up(b128, tm)
    return tm, b_pad


def pack_pi_net_params(w0, b0, w1, b1):
    """One-time parameter packing (all casts/reshapes hoisted out of forward).

    Conventions (matching the reference below): w0 is (s_dim, h_dim) = fc0.weight.T,
    w1 is (h_dim, a_dim) = fc1.weight.T.

    Batched path (batch on lanes):
      w0t_aug : (h_aug, s_dim)  rows [0:h_dim) = W0^T, rest zero
      b0col   : (h_aug, 1)      [0:h_dim) = b0, [h_dim] = 1.0 (bias-fold row)
      w1t_aug : (a_dim, h_aug)  cols [0:h_dim) = W1^T, col h_dim = b1
    Single-state path (hidden on lanes), one small slab (rows, 128):
      rows [off_w0, off_w0+s_dim) : W0 rows in lanes [0:h_dim)
      row   off_b0                : b0 in lanes [0:h_dim), 1.0 at lane h_dim
      rows [off_w1t, +a_dim)      : W1^T in lanes [0:h_dim), b1 at lane h_dim
    """
    w0 = jnp.asarray(w0, jnp.float32)
    b0 = jnp.asarray(b0, jnp.float32)
    w1 = jnp.asarray(w1, jnp.float32)
    b1 = jnp.asarray(b1, jnp.float32)
    s_dim, h_dim = w0.shape
    a_dim = w1.shape[1]
    assert h_dim < LANES, "bias-fold lane requires h_dim < 128"
    assert s_dim <= LANES and a_dim <= LANES

    # --- batched path params ---
    h_aug = _round_up(h_dim + 1, 8)
    w0t_aug = jnp.zeros((h_aug, s_dim), jnp.float32).at[:h_dim, :].set(w0.T)
    b0col = (jnp.zeros((h_aug, 1), jnp.float32)
             .at[:h_dim, 0].set(b0)
             .at[h_dim, 0].set(1.0))
    w1t_aug = (jnp.zeros((a_dim, h_aug), jnp.float32)
               .at[:, :h_dim].set(w1.T)
               .at[:, h_dim].set(b1))

    # --- single-state slab (slim: no padded 128x128 W1 section) ---
    off_w0 = 0
    off_b0 = _round_up(s_dim, 8)
    off_w1t = off_b0 + 8
    rows = off_w1t + _round_up(a_dim, 8)
    slab = jnp.zeros((rows, LANES), jnp.float32)
    slab = slab.at[off_w0:off_w0 + s_dim, :h_dim].set(w0)
    slab = slab.at[off_b0, :h_dim].set(b0)
    slab = slab.at[off_b0, h_dim].set(1.0)            # bias-fold lane
    slab = slab.at[off_w1t:off_w1t + a_dim, :h_dim].set(w1.T)
    slab = slab.at[off_w1t:off_w1t + a_dim, h_dim].set(b1)

    return dict(
        dims=(s_dim, h_dim, a_dim),
        w0t_aug=w0t_aug, b0col=b0col, w1t_aug=w1t_aug,
        slab=slab, offs=dict(w0=off_w0, b0=off_b0, w1t=off_w1t),
    )


# ----------------------------------------------------------------------------
# Batched kernel: batch on the lane axis.  (s_dim, tile_m) in -> (a_dim, tile_m)
# out, softmax only over the a_dim real action rows, exact normalization.
# ----------------------------------------------------------------------------
def _pi_net_batched_kernel(xT_ref, w0t_ref, b0c_ref, w1t_ref, out_ref):
    xT = xT_ref[...]                                        # (s_dim, tile_m)

    # fc0 + ReLU. Row h_dim of h is exactly 1.0 (bias-fold row); rows beyond
    # are zero (zero-padded weights), so they contribute nothing to fc1.
    h = jnp.dot(w0t_ref[...], xT,
                preferred_element_type=jnp.float32) + b0c_ref[...]
    h = jnp.maximum(h, 0.0)                                 # (h_aug, tile_m)

    # fc1 with b1 folded into column h_dim of w1t_aug.
    logits = jnp.dot(w1t_ref[...], h,
                     preferred_element_type=jnp.float32)    # (a_dim, tile_m)

    # Numerically-stable softmax over the a_dim action rows; exact divide so
    # probabilities sum to 1 to f32 rounding.
    m = jnp.max(logits, axis=0, keepdims=True)
    e = jnp.exp(logits - m)
    out_ref[...] = e / jnp.sum(e, axis=0, keepdims=True)    # lane-dense store


def pi_net_forward_batched(states, params, *, tile_m=None):
    """states: (B, s_dim) -> per-state action probabilities (B, a_dim)."""
    s_dim, h_dim, a_dim = params["dims"]
    B = states.shape[0]
    tile_m, b_pad = _plan_batch_tiling(B, tile_m)

    xT = jnp.asarray(states, jnp.float32).T                 # (s_dim, B)
    if b_pad != B:
        xT = jnp.pad(xT, ((0, 0), (0, b_pad - B)))

    out = pl.pallas_call(
        _pi_net_batched_kernel,
        out_shape=jax.ShapeDtypeStruct((a_dim, b_pad), jnp.float32),
        grid=(b_pad // tile_m,),
        in_specs=[
            pl.BlockSpec((s_dim, tile_m), lambda i: (0, i)),
            pl.BlockSpec(params["w0t_aug"].shape, lambda i: (0, 0)),
            pl.BlockSpec(params["b0col"].shape, lambda i: (0, 0)),
            pl.BlockSpec(params["w1t_aug"].shape, lambda i: (0, 0)),
        ],
        out_specs=pl.BlockSpec((a_dim, tile_m), lambda i: (0, i)),
        compiler_params=pltpu.CompilerParams(
            dimension_semantics=("parallel",)),
    )(xT, params["w0t_aug"], params["b0col"], params["w1t_aug"])
    return out[:, :B].T                                     # (B, a_dim)


# ----------------------------------------------------------------------------
# Single-state kernel: MXU-free. State in SMEM, fc0 as scalar-broadcast VPU
# FMAs, fc1 as elementwise multiply + lane reduction (b1 folded into lane
# h_dim), exact softmax over the a_dim actions, tiny (a_dim, 1) output.
# ----------------------------------------------------------------------------
def _pi_net_single_kernel(x_ref, slab_ref, out_ref, *, s_dim, a_dim,
                          off_w0, off_b0, off_w1t):
    # fc0 + ReLU: h = relu(sum_k x[k] * W0[k, :] + b0)  -> (1, 128)
    acc = slab_ref[pl.ds(off_b0, 1), :]                     # lane h_dim == 1.0
    for k in range(s_dim):                                  # static unroll
        acc = acc + x_ref[k] * slab_ref[pl.ds(off_w0 + k, 1), :]
    h = jnp.maximum(acc, 0.0)                               # lanes > h_dim are 0

    # fc1 (+ folded b1): logits[a] = sum_lanes(h * w1t_aug[a, :]) -> (a_dim, 1)
    w1t = slab_ref[pl.ds(off_w1t, a_dim), :]                # (a_dim, 128)
    logits = jnp.sum(h * w1t, axis=-1, keepdims=True)

    # Softmax over the action axis, exact normalization.
    m = jnp.max(logits, axis=0, keepdims=True)
    e = jnp.exp(logits - m)
    out_ref[...] = e / jnp.sum(e, axis=0, keepdims=True)    # (a_dim, 1)


def pi_net_forward(state, params):
    """state: (s_dim,) -> action probabilities (a_dim,). VPU/XLU-only."""
    s_dim, h_dim, a_dim = params["dims"]
    offs = params["offs"]
    x = jnp.asarray(state, jnp.float32).reshape(s_dim)

    kernel = functools.partial(
        _pi_net_single_kernel, s_dim=s_dim, a_dim=a_dim,
        off_w0=offs["w0"], off_b0=offs["b0"], off_w1t=offs["w1t"])

    out = pl.pallas_call(
        kernel,
        out_shape=jax.ShapeDtypeStruct((a_dim, 1), jnp.float32),
        grid=(),
        in_specs=[
            pl.BlockSpec(memory_space=pltpu.MemorySpace.SMEM),  # state scalars
            pl.BlockSpec(params["slab"].shape, lambda: (0, 0)),  # param slab
        ],
        out_specs=pl.BlockSpec((a_dim, 1), lambda: (0, 0)),
    )(x, params["slab"])
    # TODO(synk): if called per env step, fuse action sampling (Gumbel/CDF via
    # pltpu.prng_*) into this kernel instead of returning probabilities.
    return out[:, 0]


# ----------------------------------------------------------------------------
# Reference + self-test
# ----------------------------------------------------------------------------
def _ref_forward(state, w0, b0, w1, b1):
    h = jnp.maximum(state @ w0 + b0, 0.0)
    return jax.nn.softmax(h @ w1 + b1, axis=-1)   # == softmax(dim=0) for 1-D


if __name__ == "__main__":
    # CartPole-like dims: s_dim=4 observations, h_dim=32 hidden, a_dim=2 actions.
    s_dim, h_dim, a_dim = 4, 32, 2

    key = jax.random.PRNGKey(0)
    k_state, k_w0, k_b0, k_w1, k_b1, k_batch = jax.random.split(key, 6)

    bound0 = 1.0 / (s_dim ** 0.5)
    bound1 = 1.0 / (h_dim ** 0.5)
    w0 = jax.random.uniform(k_w0, (s_dim, h_dim), jnp.float32, -bound0, bound0)
    b0 = jax.random.uniform(k_b0, (h_dim,), jnp.float32, -bound0, bound0)
    w1 = jax.random.uniform(k_w1, (h_dim, a_dim), jnp.float32, -bound1, bound1)
    b1 = jax.random.uniform(k_b1, (a_dim,), jnp.float32, -bound1, bound1)

    # One-time packing: casts/reshapes/bias-folding hoisted out of the forward.
    params = pack_pi_net_params(w0, b0, w1, b1)

    # --- single-state (original module semantics), MXU-free kernel ----------
    state = jax.random.normal(k_state, (s_dim,), jnp.float32)
    probs = jax.block_until_ready(pi_net_forward(state, params))
    ref = _ref_forward(state, w0, b0, w1, b1)
    assert probs.shape == (a_dim,)
    assert jnp.allclose(probs, ref, atol=2e-3, rtol=2e-3), (probs, ref)
    assert jnp.allclose(jnp.sum(probs), 1.0, atol=1e-5)

    # --- batched rollout path (same per-state semantics), transposed kernel -
    for B in (256, 37):
        states = jax.random.normal(jax.random.fold_in(k_batch, B),
                                   (B, s_dim), jnp.float32)
        probs_b = jax.block_until_ready(pi_net_forward_batched(states, params))
        ref_b = jax.vmap(lambda s: _ref_forward(s, w0, b0, w1, b1))(states)
        assert probs_b.shape == (B, a_dim)
        assert jnp.allclose(probs_b, ref_b, atol=2e-3, rtol=2e-3)
        assert jnp.allclose(jnp.sum(probs_b, axis=-1), 1.0, atol=1e-5)

    print("KERNEL_OK")
</pallas_src>

<mosaic_0001>
module attributes {stable_mosaic.version = 11 : i64} {
  func.func @_pi_net_single_kernel(%arg0: memref<4xf32, #tpu.memory_space<smem>>, %arg1: memref<24x128xf32, #tpu.memory_space<vmem>>, %arg2: memref<2x1xf32, #tpu.memory_space<vmem>>) attributes {dimension_semantics = [], scalar_prefetch = 0 : i64, scratch_operands = 0 : i64, tpu.core_type = #tpu.core_type<tc>} {
    %c8 = arith.constant 8 : index
    %c0 = arith.constant 0 : index
    %0 = vector.load %arg1[%c8, %c0] : memref<24x128xf32, #tpu.memory_space<vmem>>, vector<1x128xf32>
    %c0_0 = arith.constant 0 : index
    %1 = memref.load %arg0[%c0_0] : memref<4xf32, #tpu.memory_space<smem>>
    %c0_1 = arith.constant 0 : index
    %c0_2 = arith.constant 0 : index
    %2 = vector.load %arg1[%c0_1, %c0_2] : memref<24x128xf32, #tpu.memory_space<vmem>>, vector<1x128xf32>
    %3 = vector.broadcast %1 : f32 to vector<1x128xf32>
    %4 = arith.mulf %3, %2 : vector<1x128xf32>
    %5 = arith.addf %0, %4 : vector<1x128xf32>
    %c1 = arith.constant 1 : index
    %6 = memref.load %arg0[%c1] : memref<4xf32, #tpu.memory_space<smem>>
    %c1_3 = arith.constant 1 : index
    %c0_4 = arith.constant 0 : index
    %7 = vector.load %arg1[%c1_3, %c0_4] : memref<24x128xf32, #tpu.memory_space<vmem>>, vector<1x128xf32>
    %8 = vector.broadcast %6 : f32 to vector<1x128xf32>
    %9 = arith.mulf %8, %7 : vector<1x128xf32>
    %10 = arith.addf %5, %9 : vector<1x128xf32>
    %c2 = arith.constant 2 : index
    %11 = memref.load %arg0[%c2] : memref<4xf32, #tpu.memory_space<smem>>
    %c2_5 = arith.constant 2 : index
    %c0_6 = arith.constant 0 : index
    %12 = vector.load %arg1[%c2_5, %c0_6] : memref<24x128xf32, #tpu.memory_space<vmem>>, vector<1x128xf32>
    %13 = vector.broadcast %11 : f32 to vector<1x128xf32>
    %14 = arith.mulf %13, %12 : vector<1x128xf32>
    %15 = arith.addf %10, %14 : vector<1x128xf32>
    %c3 = arith.constant 3 : index
    %16 = memref.load %arg0[%c3] : memref<4xf32, #tpu.memory_space<smem>>
    %c3_7 = arith.constant 3 : index
    %c0_8 = arith.constant 0 : index
    %17 = vector.load %arg1[%c3_7, %c0_8] : memref<24x128xf32, #tpu.memory_space<vmem>>, vector<1x128xf32>
    %18 = vector.broadcast %16 : f32 to vector<1x128xf32>
    %19 = arith.mulf %18, %17 : vector<1x128xf32>
    %20 = arith.addf %15, %19 : vector<1x128xf32>
    %cst = arith.constant 0.000000e+00 : f32
    %21 = vector.broadcast %cst : f32 to vector<1x128xf32>
    %22 = arith.maximumf %20, %21 : vector<1x128xf32>
    %c16 = arith.constant 16 : index
    %c0_9 = arith.constant 0 : index
    %23 = vector.load %arg1[%c16, %c0_9] : memref<24x128xf32, #tpu.memory_space<vmem>>, vector<2x128xf32>
    %24 = vector.broadcast %22 : vector<1x128xf32> to vector<2x128xf32>
    %25 = arith.mulf %24, %23 : vector<2x128xf32>
    %cst_10 = arith.constant dense<0.000000e+00> : vector<2xf32>
    %26 = vector.multi_reduction <add>, %25, %cst_10 [1] : vector<2x128xf32> to vector<2xf32>
    %27 = vector.shape_cast %26 : vector<2xf32> to vector<2x1xf32>
    %cst_11 = arith.constant dense<0xFF800000> : vector<1xf32>
    %28 = vector.multi_reduction <maximumf>, %27, %cst_11 [0] : vector<2x1xf32> to vector<1xf32>
    %29 = vector.shape_cast %28 : vector<1xf32> to vector<1x1xf32>
    %30 = vector.broadcast %29 : vector<1x1xf32> to vector<2x1xf32>
    %31 = arith.subf %27, %30 : vector<2x1xf32>
    %32 = math.exp %31 : vector<2x1xf32>
    %cst_12 = arith.constant dense<0.000000e+00> : vector<1xf32>
    %33 = vector.multi_reduction <add>, %32, %cst_12 [0] : vector<2x1xf32> to vector<1xf32>
    %34 = vector.shape_cast %33 : vector<1xf32> to vector<1x1xf32>
    %35 = vector.broadcast %34 : vector<1x1xf32> to vector<2x1xf32>
    %36 = arith.divf %32, %35 : vector<2x1xf32>
    %c0_13 = arith.constant 0 : index
    %c0_14 = arith.constant 0 : index
    %37 = vector.load %arg2[%c0_13, %c0_14] : memref<2x1xf32, #tpu.memory_space<vmem>>, vector<2x1xf32>
    tpu.vector_store %arg2[%c0_13, %c0_14], %36 {strides = array<i32>} : memref<2x1xf32, #tpu.memory_space<vmem>>, vector<2x1xf32>,
    return
  }
}

</mosaic_0001>

<bundles_post_ra>
// kernel: tpu_custom_call.1
= control target key start
LH: loop header
LB: loop body
LE: loop exit
PB: predicated region body
PF: predicated region fallthrough
CT: control target
= control target key end

     0   :  { %7 = vsyncpa [#allocation4], 0  ;;  %s191_s0 = inlined_call_operand.hbm [shape: f32[4], index: 0, kind: input, shape index: {}]   ;;  %s192_s1 = inlined_call_operand.hbm [shape: f32[24,128], index: 1, kind: input, shape index: {}]   ;;  %s193_s2 = inlined_call_operand.vmem [shape: f32[2,1], index: 2, kind: output, shape index: {}]  }
   0x1   :  { %8 = vsyncpa [#allocation3], 0  ;;  %s106_s11 = scalar_lea.hbm %s191_s0, 16 }
   0x2   :  { %p107_p0 = scmp.ne.s32.totalorder %s191_s0, %s106_s11  ;;  %p110_p1 = scmp.lt.u32.totalorder %s106_s11, %s191_s0 }
   0x4   :  { %p112_p2 = pnand %p110_p1, %p107_p0 }
   0x6   :  { %115 = shalt.err (!%p112_p2)
}
   0x7   :  { %s142_s16 = smov [#allocation2]   ;;  %s143_s19 = smov [#allocation5]  }
   0x8   :  { %16 = dma.hbm_to_smem %s191_s0, 16, %s142_s16, [#allocation4]  }
   0x9   :  { %s22_s20 = sshll.u32 %s143_s19, 4  ;;  %s116_s23 = scalar_lea.hbm %s192_s1, 384  ;;  %s23_s20 = int_to_ptr.vmem [resolvable:$true] %s22_s20 }
   0xa   :  { %p117_p3 = scmp.ne.s32.totalorder %s192_s1, %s116_s23  ;;  %p120_p4 = scmp.lt.u32.totalorder %s116_s23, %s192_s1 }
   0xc   :  { %p122_p5 = pnand %p120_p4, %p117_p3 }
   0xe   :  { %125 = shalt.err (!%p122_p5)
}
   0xf   :  { %s126_s28 = scalar_lea.vmem %s23_s20, 384  ;;  %p131_p7 = scmp.lt.s32.totalorder %s23_s20, %s23_s20 }
  0x10   :  { %p127_p6 = scmp.ne.s32.totalorder %s23_s20, %s126_s28  ;;  %p132_p8 = scmp.lt.s32.totalorder %s126_s28, %s126_s28 }
  0x12   :  { %p133_p9 = por %p132_p8, %p131_p7 }
  0x14   :  { %p134_p10 = pnand %p133_p9, %p127_p6 }
  0x16   :  { %137 = shalt.err (!%p134_p10)
}
  0x17   :  { %s144_s0 = smov 128   ;;  %s145_s29 = smov 8  }
  0x18   :  { %28 = dma.hbm_to_vmem [thread:$0]  %s192_s1, 384, %s23_s20, [#allocation3], %s144_s0, %s144_s0, %s145_s29  }
  0x19   :  { %138 = dma.done.wait [#allocation4], 16  }
  0x1a   :  { %139 = vsyncadd [#allocation4], 4294967280 }
  0x1b   :  { %140 = dma.done.wait [#allocation3], 384  }
  0x1c   :  { %141 = vsyncadd [#allocation3], 4294966912 }
  0x1d   :  { %35 = sfence }
  0x1e   :  { %s37_s4 = sld [smem:[#allocation2]]  ;;  %s95_s5 = sld [smem:[#allocation2 + $0x1]]  ;;  %v38_v0 = vld [vmem:[#allocation5] sm:$0x1]  ;;  %v43_v1 = vld [vmem:[#allocation5 + $0x1] sm:$0x1]  ;;  %v59_v8 = vlaneseq }
  0x1f   :  { %s96_s6 = sld [smem:[#allocation2 + $0x2]]  ;;  %s97_s7 = sld [smem:[#allocation2 + $0x3]]  ;;  %v36_v2 = vld [vmem:[#allocation5 + $0x8] sm:$0x1]  ;;  %v48_v4 = vld [vmem:[#allocation5 + $0x2] sm:$0x1] }
  0x20   :  { %v53_v10 = vld [vmem:[#allocation5 + $0x3] sm:$0x1]  ;;  %v60_v16 = vshrl.u32 %v59_v8, 7  ;;  %v58_v21 = vld [vmem:[#allocation5 + $0x10] sm:$0x3]  ;;  %vm64_vm0 = vcmask 1041408  }
  0x21   :  { %vm87_vm1 = vcmask 1024  }
  0x22   :  { %v61_v19 = vsub.s32 0, %v60_v16 }
  0x24   :  { %v39_v3 = vstv %s37_s4  ;;  %v44_v6 = vstv %s95_s5 }
  0x25   :  { %v40_v5 = vmul.f32 %v39_v3, %v38_v0  ;;  %v49_v7 = vstv %s96_s6  ;;  %v45_v9 = vmul.f32 %v44_v6, %v43_v1  ;;  %v54_v11 = vstv %s97_s7 }
  0x26   :  { %v50_v13 = vmul.f32 %v49_v7, %v48_v4  ;;  %v55_v15 = vmul.f32 %v54_v11, %v53_v10 }
  0x27   :  { %v41_v12 = vadd.f32 %v40_v5, %v36_v2 }
  0x29   :  { %v46_v14 = vadd.f32 %v45_v9, %v41_v12 }
  0x2b   :  { %v51_v17 = vadd.f32 %v50_v13, %v46_v14 }
  0x2d   :  { %v56_v18 = vadd.f32 %v55_v15, %v51_v17 }
  0x2f   :  { %v57_v20 = vmax.f32 %v56_v18, 0.0 }
  0x31   :  { %v62_v22 = vrot.slane %v57_v20, %v61_v19 }
  0x33   :  { %v63_v23 = vmul.f32 %v62_v22, %v58_v21 }
  0x35   :  { %v65_v24 = vsel %vm64_vm0, %v63_v23, 0.0 }
  0x36   :  { %66 = vadd.xlane.f32.xlu0 %v65_v24 }
  0xc3   :  { %v67_v25 = vpop.xlane.xlu0 %66 }
  0xc4   :  { %v68_v26 = vsel %vm64_vm0, %v67_v25, -inf }
  0xc5   :  { %v69_v27 = vrot.slane %v68_v26, 4 }
  0xc7   :  { %v70_v28 = vmax.f32 %v68_v26, %v69_v27 }
  0xc9   :  { %v71_v29 = vrot.slane %v70_v28, 2 }
  0xcb   :  { %v72_v30 = vmax.f32 %v70_v28, %v71_v29 }
  0xcd   :  { %v73_v31 = vrot.slane %v72_v30, 1 }
  0xcf   :  { %v74_v32 = vmax.f32 %v72_v30, %v73_v31 }
  0xd1   :  { %v75_v33 = vsub.f32 %v67_v25, %v74_v32 }
  0xd3   :  { %v76_v34 = vmul.f32 1.442695, %v75_v33 }
  0xd5   :  { %102 = vpow2.f32 %v76_v34 }
  0xdf   :  { %v103_v35 = vpop.eup %102 }
  0xe0   :  { %v78_v36 = vsel %vm64_vm0, %v103_v35, 0.0 }
  0xe1   :  { %v79_v37 = vrot.slane %v78_v36, 4 }
  0xe3   :  { %v80_v38 = vadd.f32 %v79_v37, %v78_v36 }
  0xe5   :  { %v81_v39 = vrot.slane %v80_v38, 2 }
  0xe7   :  { %v82_v40 = vadd.f32 %v81_v39, %v80_v38 }
  0xe9   :  { %v83_v41 = vrot.slane %v82_v40, 1 }
  0xeb   :  { %v84_v42 = vadd.f32 %v83_v41, %v82_v40 }
  0xed   :  { %104 = vrcp.f32 %v84_v42 }
  0xf7   :  { %v105_v43 = vpop.eup %104 }
  0xf8   :  { %v86_v44 = vmul.f32 %v105_v43, %v103_v35 }
  0xfa   :  { %88 = vst.msk [vmem:[%s193_s2] sm:$0x3] %vm87_vm1, %v86_v44 }
  0xfb   :  { %93 = vsyncpa [#allocation3], 1 }
  0xfc   :  { %94 = vsyncpa [#allocation4], 1 }

</bundles_post_ra>
